<compile_context>
chip_gen: v7x
topology: tpu7x:2x2x1
jax: 0.10.0
libtpu: 0.0.40
codegen_flags: <defaults>
</compile_context>

<pallas_src>
import functools

import jax
import jax.numpy as jnp
from jax.experimental import pallas as pl
from jax.experimental.pallas import tpu as pltpu

_MIB = 1024 * 1024


def _round_up(n, m):
    return (n + m - 1) // m * m


# ----- one-time probes (kept out of the per-call dispatch path) -----------------

def _probe_buffered():
    if not hasattr(pl, "Buffered"):
        return False
    try:
        pl.BlockSpec((8, 128), lambda i, h: (0, 0), pipeline_mode=pl.Buffered(1))
        return True
    except Exception:
        return False


_HAS_BUFFERED = _probe_buffered()


def _default_vmem_limit():
    # ~75% of physical per-core VMEM: ~48 MiB on v7x (64 MiB/TC, megacore-replicated),
    # ~96 MiB on v5e/v6e (128 MiB).  Leaves headroom for compiler scratch/spills.
    try:
        cap = pltpu.get_tpu_info().vmem_capacity_bytes
        return max(32 * _MIB, min((cap * 3) // 4, 112 * _MIB))
    except Exception:
        return 48 * _MIB  # conservative fallback, safe on every generation incl. v7x


_VMEM_LIMIT = _default_vmem_limit()


def _vmem_estimate(tm, c, th, x_itemsize, w_itemsize):
    """Rough per-core VMEM footprint for one tile configuration."""
    return (2 * tm * c * x_itemsize        # x tile (double buffered)
            + 2 * tm * c * x_itemsize      # out tile (double buffered)
            + 2 * c * th * w_itemsize      # W1 chunk (double buffered)
            + 2 * th * c * w_itemsize      # W2 chunk (double buffered)
            + tm * c * 4                   # f32 accumulator scratch
            + tm * c * w_itemsize          # LayerNorm-result scratch
            + tm * th * 4                  # (TM, TH) activation temp
            + 4 * c * 4)                   # gamma / beta


# ----- kernel --------------------------------------------------------------------

def _ffn_kernel(x_ref, g_ref, b_ref, w1_ref, w2_ref, o_ref, acc_ref, xn_ref):
    """Grid = (token tiles [parallel], hidden chunks [arbitrary]).

    For one (TM, C) token tile:
      h == 0    : LayerNorm -> xn scratch; zero the (TM, C) f32 accumulator
      every h   : (TM,C)@(C,TH) on the MXU -> erf-GELU -> (TM,TH)@(TH,C) accumulated
      h == last : write accumulator to the output tile
    """
    h_idx = pl.program_id(1)

    @pl.when(h_idx == 0)
    def _():
        # LayerNorm in f32 on the VPU; gamma/beta broadcast over the token tile.
        x = x_ref[...].astype(jnp.float32)
        mu = jnp.mean(x, axis=-1, keepdims=True)
        xc = x - mu
        var = jnp.mean(xc * xc, axis=-1, keepdims=True)
        xn = xc * jax.lax.rsqrt(var + 1e-5)
        xn = xn * g_ref[...].astype(jnp.float32) + b_ref[...].astype(jnp.float32)
        xn_ref[...] = xn.astype(xn_ref.dtype)
        acc_ref[...] = jnp.zeros_like(acc_ref)

    # Linear(C -> TH) chunk: operands in the weights' native dtype (bf16 weights
    # take the fast bf16 MXU path), f32 accumulation.
    hpre = jnp.dot(xn_ref[...], w1_ref[...], preferred_element_type=jnp.float32)

    # Exact (erf) GELU -- matches torch nn.GELU() default.  Applied per chunk so the
    # full (TM, H) f32 intermediate never materializes.
    hact = 0.5 * hpre * (1.0 + jax.lax.erf(hpre * 0.7071067811865476))

    # Linear(TH -> C) chunk, accumulated across hidden chunks.
    acc_ref[...] += jnp.dot(hact.astype(w2_ref.dtype), w2_ref[...],
                            preferred_element_type=jnp.float32)

    @pl.when(h_idx == pl.num_programs(1) - 1)
    def _():
        o_ref[...] = acc_ref[...].astype(o_ref.dtype)


# ----- pallas_call builder (cached per static configuration) ----------------------

@functools.lru_cache(maxsize=None)
def _build_ffn_call(n_pad, c, h_pad, tm, th, w_dtype_name, out_dtype_name):
    w_dtype = jnp.dtype(w_dtype_name)
    out_dtype = jnp.dtype(out_dtype_name)

    const_kw = {"pipeline_mode": pl.Buffered(1)} if _HAS_BUFFERED else {}

    n_tiles = n_pad // tm
    h_tiles = h_pad // th

    # Advisory cost hint: 2 matmuls + LayerNorm/GELU elementwise.  Weight chunks are
    # re-streamed once per token tile (their block index changes when `i` advances).
    flops = 4 * n_pad * c * h_pad + 12 * n_pad * c + 8 * n_pad * h_pad
    transcendentals = n_pad * h_pad + n_pad                  # erf per hidden elem + rsqrt
    bytes_accessed = (2 * n_pad * c * out_dtype.itemsize
                      + 2 * c * h_pad * w_dtype.itemsize * n_tiles
                      + 4 * c * 4)

    return pl.pallas_call(
        _ffn_kernel,
        out_shape=jax.ShapeDtypeStruct((n_pad, c), out_dtype),
        grid_spec=pltpu.PrefetchScalarGridSpec(
            num_scalar_prefetch=0,
            grid=(n_tiles, h_tiles),
            in_specs=[
                pl.BlockSpec((tm, c), lambda i, h: (i, 0)),                # x tokens
                pl.BlockSpec((1, c), lambda i, h: (0, 0), **const_kw),     # gamma
                pl.BlockSpec((1, c), lambda i, h: (0, 0), **const_kw),     # beta
                pl.BlockSpec((c, th), lambda i, h: (0, h)),                # W1 chunk
                pl.BlockSpec((th, c), lambda i, h: (h, 0)),                # W2 chunk
            ],
            out_specs=pl.BlockSpec((tm, c), lambda i, h: (i, 0)),
            scratch_shapes=[
                pltpu.VMEM((tm, c), jnp.float32),   # second-matmul accumulator
                pltpu.VMEM((tm, c), w_dtype),       # LayerNorm result, reused across H
            ],
        ),
        compiler_params=pltpu.CompilerParams(
            dimension_semantics=("parallel", "arbitrary"),
            vmem_limit_bytes=_VMEM_LIMIT,
        ),
        cost_estimate=pl.CostEstimate(
            flops=flops,
            transcendentals=transcendentals,
            bytes_accessed=bytes_accessed,
        ),
    )


# ----- public wrapper --------------------------------------------------------------

def feed_forward(x, gamma, beta, w1, w2, *, tm=256, th=512, weights_dtype=None):
    """x: (..., C) channels-last.  w1: (C, H), w2: (H, C).  Returns x.shape.

    Pass bf16 weights (or weights_dtype=jnp.bfloat16) for the fast MXU path on
    v6e/v7x; accumulation stays f32 either way.
    """
    orig_shape = x.shape
    C = orig_shape[-1]
    H = w1.shape[1]

    if weights_dtype is not None:
        w1 = w1.astype(weights_dtype)
    w2 = w2.astype(w1.dtype)
    w_dtype = jnp.dtype(w1.dtype)
    x_dtype = jnp.dtype(x.dtype)

    N = 1
    for d in orig_shape[:-1]:
        N *= d

    x2d = x.reshape(N, C)
    g2d = gamma.reshape(1, C)
    b2d = beta.reshape(1, C)

    # Token tile: multiple of 256 (fills MXU rows on v5e's 4x128 and v6e/v7x's
    # 256x256), clamped to the sublane-rounded token count for small N.
    sub = 8 if x_dtype.itemsize >= 4 else (16 if x_dtype.itemsize == 2 else 32)
    tm = max(sub, min(_round_up(tm, 256), _round_up(N, sub)))
    n_pad = _round_up(N, tm)

    # Hidden chunk: the whole of H when it fits, otherwise 128-multiple chunks that
    # (double-buffered) stay inside the per-generation VMEM budget.
    if H <= th:
        th = H
        h_pad = H
    else:
        th = max(128, _round_up(min(th, H), 128))
        while th > 128 and _vmem_estimate(tm, C, th, x_dtype.itemsize,
                                          w_dtype.itemsize) > _VMEM_LIMIT:
            th = max(128, th // 2)
        h_pad = _round_up(H, th)

    if n_pad != N:
        x2d = jnp.pad(x2d, ((0, n_pad - N), (0, 0)))
    if h_pad != H:
        # Zero-padded hidden units contribute GELU(0) * 0 == 0 to the output.
        w1 = jnp.pad(w1, ((0, 0), (0, h_pad - H)))
        w2 = jnp.pad(w2, ((0, h_pad - H), (0, 0)))

    call = _build_ffn_call(n_pad, C, h_pad, tm, th, w_dtype.name, x_dtype.name)
    out2d = call(x2d, g2d, b2d, w1, w2)

    if n_pad != N:
        out2d = out2d[:N]
    return out2d.reshape(orig_shape)


# ----- reference & test ------------------------------------------------------------

def _reference(x, gamma, beta, w1, w2):
    x = x.astype(jnp.float32)
    mu = jnp.mean(x, axis=-1, keepdims=True)
    var = jnp.mean((x - mu) ** 2, axis=-1, keepdims=True)
    xn = (x - mu) / jnp.sqrt(var + 1e-5) * gamma + beta
    h = xn @ w1.astype(jnp.float32)
    h = jax.nn.gelu(h, approximate=False)
    return h @ w2.astype(jnp.float32)


if __name__ == "__main__":
    key = jax.random.PRNGKey(0)

    # --- Test 1: module-default shapes (hidden = in_channels // 4) ---
    B, S, C = 2, 8, 32
    H = C // 4
    kx, kw1, kw2, kx2, kw3, kw4, kx3 = jax.random.split(key, 7)

    x = jax.random.normal(kx, (B, S, C), dtype=jnp.float32)
    gamma = jnp.ones((C,), dtype=jnp.float32)       # nn.LayerNorm init
    beta = jnp.zeros((C,), dtype=jnp.float32)
    w1 = jax.random.normal(kw1, (C, H), dtype=jnp.float32) * 0.1   # nn.Linear (in,out)
    w2 = jax.random.normal(kw2, (H, C), dtype=jnp.float32) * 0.1

    out = feed_forward(x, gamma, beta, w1, w2)
    jax.block_until_ready(out)
    ref = _reference(x, gamma, beta, w1, w2)
    assert out.shape == (B, S, C)
    assert jnp.allclose(out, ref, atol=1e-4, rtol=1e-4), "mismatch vs reference"

    # --- Test 2: multi H-chunk accumulation path (and padded hidden dim) ---
    C2, H2 = 128, 320            # th=256 -> 2 hidden chunks, H padded 320 -> 512
    x2 = jax.random.normal(kx2, (2, 64, C2), dtype=jnp.float32)
    g2 = jnp.ones((C2,), dtype=jnp.float32)
    b2 = jnp.zeros((C2,), dtype=jnp.float32)
    w1b = jax.random.normal(kw3, (C2, H2), dtype=jnp.float32) * 0.05
    w2b = jax.random.normal(kw4, (H2, C2), dtype=jnp.float32) * 0.05
    out2 = feed_forward(x2, g2, b2, w1b, w2b, th=256)
    jax.block_until_ready(out2)
    ref2 = _reference(x2, g2, b2, w1b, w2b)
    assert out2.shape == x2.shape
    assert jnp.allclose(out2, ref2, atol=1e-4, rtol=1e-4), "mismatch (H-tiled)"

    # --- Test 3: odd token count exercises the padded-remainder path ---
    x_odd = jax.random.normal(kx3, (3, 5, C), dtype=jnp.float32)
    out_odd = feed_forward(x_odd, gamma, beta, w1, w2)
    jax.block_until_ready(out_odd)
    ref_odd = _reference(x_odd, gamma, beta, w1, w2)
    assert out_odd.shape == (3, 5, C)
    assert jnp.allclose(out_odd, ref_odd, atol=1e-4, rtol=1e-4), "mismatch (odd N)"

    print("KERNEL_OK")
</pallas_src>

<mosaic_0001>
module attributes {stable_mosaic.version = 11 : i64} {
  func.func @_ffn_kernel(%arg0: i32, %arg1: i32, %arg2: memref<16x32xf32, #tpu.memory_space<vmem>>, %arg3: memref<1x32xf32, #tpu.memory_space<vmem>>, %arg4: memref<1x32xf32, #tpu.memory_space<vmem>>, %arg5: memref<32x8xf32, #tpu.memory_space<vmem>>, %arg6: memref<8x32xf32, #tpu.memory_space<vmem>>, %arg7: memref<16x32xf32, #tpu.memory_space<vmem>>, %arg8: memref<16x32xf32, #tpu.memory_space<vmem>>, %arg9: memref<16x32xf32, #tpu.memory_space<vmem>>) attributes {dimension_semantics = [#tpu.dimension_semantics<parallel>, #tpu.dimension_semantics<arbitrary>], iteration_bounds = array<i64: 1, 1>, scalar_prefetch = 0 : i64, scratch_operands = 2 : i64, tpu.core_type = #tpu.core_type<tc>, window_params = [{transform_indices = @transform_0, window_bounds = array<i64: 16, 32>}, {pipeline_mode = #tpu.pipeline_mode<synchronous>, transform_indices = @transform_1, window_bounds = array<i64: 1, 32>}, {pipeline_mode = #tpu.pipeline_mode<synchronous>, transform_indices = @transform_2, window_bounds = array<i64: 1, 32>}, {transform_indices = @transform_3, window_bounds = array<i64: 32, 8>}, {transform_indices = @transform_4, window_bounds = array<i64: 8, 32>}, {transform_indices = @transform_5, window_bounds = array<i64: 16, 32>}]} {
    %c0_i32 = arith.constant 0 : i32
    %0 = arith.cmpi eq, %arg1, %c0_i32 : i32
    %1 = arith.extui %0 : i1 to i32
    %c0_i32_0 = arith.constant 0 : i32
    %2 = arith.cmpi ne, %1, %c0_i32_0 : i32
    scf.if %2 {
      %c0_16 = arith.constant 0 : index
      %c0_17 = arith.constant 0 : index
      %22 = vector.load %arg2[%c0_16, %c0_17] : memref<16x32xf32, #tpu.memory_space<vmem>>, vector<16x32xf32>
      %cst_18 = arith.constant dense<0.000000e+00> : vector<16xf32>
      %23 = vector.multi_reduction <add>, %22, %cst_18 [1] : vector<16x32xf32> to vector<16xf32>
      %24 = vector.shape_cast %23 : vector<16xf32> to vector<16x1xf32>
      %cst_19 = arith.constant 3.200000e+01 : f32
      %25 = vector.broadcast %cst_19 : f32 to vector<16x1xf32>
      %26 = arith.divf %24, %25 : vector<16x1xf32>
      %27 = vector.broadcast %26 : vector<16x1xf32> to vector<16x32xf32>
      %28 = arith.subf %22, %27 : vector<16x32xf32>
      %29 = arith.mulf %28, %28 : vector<16x32xf32>
      %cst_20 = arith.constant dense<0.000000e+00> : vector<16xf32>
      %30 = vector.multi_reduction <add>, %29, %cst_20 [1] : vector<16x32xf32> to vector<16xf32>
      %31 = vector.shape_cast %30 : vector<16xf32> to vector<16x1xf32>
      %cst_21 = arith.constant 3.200000e+01 : f32
      %32 = vector.broadcast %cst_21 : f32 to vector<16x1xf32>
      %33 = arith.divf %31, %32 : vector<16x1xf32>
      %cst_22 = arith.constant 9.99999974E-6 : f32
      %34 = vector.broadcast %cst_22 : f32 to vector<16x1xf32>
      %35 = arith.addf %33, %34 : vector<16x1xf32>
      %36 = math.rsqrt %35 : vector<16x1xf32>
      %37 = vector.broadcast %36 : vector<16x1xf32> to vector<16x32xf32>
      %38 = arith.mulf %28, %37 : vector<16x32xf32>
      %c0_23 = arith.constant 0 : index
      %c0_24 = arith.constant 0 : index
      %39 = vector.load %arg3[%c0_23, %c0_24] : memref<1x32xf32, #tpu.memory_space<vmem>>, vector<1x32xf32>
      %40 = vector.broadcast %39 : vector<1x32xf32> to vector<16x32xf32>
      %41 = arith.mulf %38, %40 : vector<16x32xf32>
      %c0_25 = arith.constant 0 : index
      %c0_26 = arith.constant 0 : index
      %42 = vector.load %arg4[%c0_25, %c0_26] : memref<1x32xf32, #tpu.memory_space<vmem>>, vector<1x32xf32>
      %43 = vector.broadcast %42 : vector<1x32xf32> to vector<16x32xf32>
      %44 = arith.addf %41, %43 : vector<16x32xf32>
      %c0_27 = arith.constant 0 : index
      %c0_28 = arith.constant 0 : index
      %45 = vector.load %arg9[%c0_27, %c0_28] : memref<16x32xf32, #tpu.memory_space<vmem>>, vector<16x32xf32>
      tpu.vector_store %arg9[%c0_27, %c0_28], %44 {strides = array<i32>} : memref<16x32xf32, #tpu.memory_space<vmem>>, vector<16x32xf32>,
      %cst_29 = arith.constant 0.000000e+00 : f32
      %46 = vector.broadcast %cst_29 : f32 to vector<16x32xf32>
      %c0_30 = arith.constant 0 : index
      %c0_31 = arith.constant 0 : index
      %47 = vector.load %arg8[%c0_30, %c0_31] : memref<16x32xf32, #tpu.memory_space<vmem>>, vector<16x32xf32>
      tpu.vector_store %arg8[%c0_30, %c0_31], %46 {strides = array<i32>} : memref<16x32xf32, #tpu.memory_space<vmem>>, vector<16x32xf32>,
    } else {
    }
    %c0 = arith.constant 0 : index
    %c0_1 = arith.constant 0 : index
    %3 = vector.load %arg9[%c0, %c0_1] : memref<16x32xf32, #tpu.memory_space<vmem>>, vector<16x32xf32>
    %c0_2 = arith.constant 0 : index
    %c0_3 = arith.constant 0 : index
    %4 = vector.load %arg5[%c0_2, %c0_3] : memref<32x8xf32, #tpu.memory_space<vmem>>, vector<32x8xf32>
    %cst = arith.constant dense<0.000000e+00> : vector<16x8xf32>
    %5 = tpu.matmul %3, %4, %cst {dimension_numbers = #tpu.dot_dimension_numbers<[1], [0], [0], [1], [0, 0, 1, 1], [], []>} : vector<16x32xf32>, vector<32x8xf32>, vector<16x8xf32> -> vector<16x8xf32>
    %cst_4 = arith.constant 5.000000e-01 : f32
    %6 = vector.broadcast %cst_4 : f32 to vector<16x8xf32>
    %7 = arith.mulf %6, %5 : vector<16x8xf32>
    %cst_5 = arith.constant 0.707106769 : f32
    %8 = vector.broadcast %cst_5 : f32 to vector<16x8xf32>
    %9 = arith.mulf %5, %8 : vector<16x8xf32>
    %10 = math.erf %9 : vector<16x8xf32>
    %cst_6 = arith.constant 1.000000e+00 : f32
    %11 = vector.broadcast %cst_6 : f32 to vector<16x8xf32>
    %12 = arith.addf %11, %10 : vector<16x8xf32>
    %13 = arith.mulf %7, %12 : vector<16x8xf32>
    %c0_7 = arith.constant 0 : index
    %c0_8 = arith.constant 0 : index
    %14 = vector.load %arg8[%c0_7, %c0_8] : memref<16x32xf32, #tpu.memory_space<vmem>>, vector<16x32xf32>
    %c0_9 = arith.constant 0 : index
    %c0_10 = arith.constant 0 : index
    %15 = vector.load %arg6[%c0_9, %c0_10] : memref<8x32xf32, #tpu.memory_space<vmem>>, vector<8x32xf32>
    %cst_11 = arith.constant dense<0.000000e+00> : vector<16x32xf32>
    %16 = tpu.matmul %13, %15, %cst_11 {dimension_numbers = #tpu.dot_dimension_numbers<[1], [0], [0], [1], [0, 0, 1, 1], [], []>} : vector<16x8xf32>, vector<8x32xf32>, vector<16x32xf32> -> vector<16x32xf32>
    %17 = arith.addf %14, %16 : vector<16x32xf32>
    %c0_12 = arith.constant 0 : index
    %c0_13 = arith.constant 0 : index
    %18 = vector.load %arg8[%c0_12, %c0_13] : memref<16x32xf32, #tpu.memory_space<vmem>>, vector<16x32xf32>
    tpu.vector_store %arg8[%c0_12, %c0_13], %17 {strides = array<i32>} : memref<16x32xf32, #tpu.memory_space<vmem>>, vector<16x32xf32>,
    %c0_i32_14 = arith.constant 0 : i32
    %19 = arith.cmpi eq, %arg1, %c0_i32_14 : i32
    %20 = arith.extui %19 : i1 to i32
    %c0_i32_15 = arith.constant 0 : i32
    %21 = arith.cmpi ne, %20, %c0_i32_15 : i32
    scf.if %21 {
      %c0_16 = arith.constant 0 : index
      %c0_17 = arith.constant 0 : index
      %22 = vector.load %arg8[%c0_16, %c0_17] : memref<16x32xf32, #tpu.memory_space<vmem>>, vector<16x32xf32>
      %c0_18 = arith.constant 0 : index
      %c0_19 = arith.constant 0 : index
      %23 = vector.load %arg7[%c0_18, %c0_19] : memref<16x32xf32, #tpu.memory_space<vmem>>, vector<16x32xf32>
      tpu.vector_store %arg7[%c0_18, %c0_19], %22 {strides = array<i32>} : memref<16x32xf32, #tpu.memory_space<vmem>>, vector<16x32xf32>,
    } else {
    }
    return
  }
  func.func @transform_0(%arg0: i32, %arg1: i32) -> (i32, i32) {
    %c0_i32 = arith.constant 0 : i32
    %c0_i32_0 = arith.constant 0 : i32
    return %arg0, %c0_i32 : i32, i32
  }
  func.func @transform_1(%arg0: i32, %arg1: i32) -> (i32, i32) {
    %c0_i32 = arith.constant 0 : i32
    %c0_i32_0 = arith.constant 0 : i32
    %c0_i32_1 = arith.constant 0 : i32
    return %c0_i32, %c0_i32_0 : i32, i32
  }
  func.func @transform_2(%arg0: i32, %arg1: i32) -> (i32, i32) {
    %c0_i32 = arith.constant 0 : i32
    %c0_i32_0 = arith.constant 0 : i32
    %c0_i32_1 = arith.constant 0 : i32
    return %c0_i32, %c0_i32_0 : i32, i32
  }
  func.func @transform_3(%arg0: i32, %arg1: i32) -> (i32, i32) {
    %c0_i32 = arith.constant 0 : i32
    %c0_i32_0 = arith.constant 0 : i32
    return %c0_i32, %arg1 : i32, i32
  }
  func.func @transform_4(%arg0: i32, %arg1: i32) -> (i32, i32) {
    %c0_i32 = arith.constant 0 : i32
    %c0_i32_0 = arith.constant 0 : i32
    return %arg1, %c0_i32 : i32, i32
  }
  func.func @transform_5(%arg0: i32, %arg1: i32) -> (i32, i32) {
    %c0_i32 = arith.constant 0 : i32
    %c0_i32_0 = arith.constant 0 : i32
    return %arg0, %c0_i32 : i32, i32
  }
}

</mosaic_0001>

<bundles_post_ra>
// kernel: tpu_custom_call.1
= control target key start
LH: loop header
LB: loop body
LE: loop exit
PB: predicated region body
PF: predicated region fallthrough
CT: control target
= control target key end

     0   :  { %vm27_vm0 = vcmask 261120   ;;  %s449_s0 = inlined_call_operand.vmem [shape: f32[16,32], index: 0, kind: input, shape index: {}]   ;;  %s450_s1 = inlined_call_operand.vmem [shape: f32[1,32], index: 1, kind: input, shape index: {}]   ;;  %s451_s2 = inlined_call_operand.vmem [shape: f32[1,32], index: 2, kind: input, shape index: {}]   ;;  %s452_s3 = inlined_call_operand.vmem [shape: f32[32,8], index: 3, kind: input, shape index: {}]   ;;  %s453_s4 = inlined_call_operand.vmem [shape: f32[8,32], index: 4, kind: input, shape index: {}]   ;;  %s454_s5 = inlined_call_operand.hbm [shape: f32[16,32], index: 5, kind: output, shape index: {}]  }
   0x1   :  { %v25_v0 = vld [vmem:[%s449_s0] sm:$0xff]  ;;  %v26_v1 = vld [vmem:[%s449_s0 + $0x8] sm:$0xff] }
   0x2   :  { %10 = vsyncpa [#allocation5], 0  ;;  %v28_v2 = vsel %vm27_vm0, %v25_v0, 0.0  ;;  %v31_v3 = vsel %vm27_vm0, %v26_v1, 0.0  ;;  %v79_v14 = vld [vmem:[%s452_s3] sm:$0xff]  ;;  %v80_v15 = vld [vmem:[%s452_s3 + $0x8] sm:$0xff] }
   0x3   :  { %29 = vadd.xlane.f32.xlu0 %v28_v2  ;;  %v318_v16 = vpack.c.bf16 %v80_v15, %v79_v14  ;;  %v81_v17 = vld [vmem:[%s452_s3 + $0x10] sm:$0xff]  ;;  %v82_v18 = vld [vmem:[%s452_s3 + $0x18] sm:$0xff]  ;;  %v287_v27 = vld [vmem:[%s450_s1] ss:$0 sm:$0xff]  ;;  %v362_v39 = vmov 0.0   ;;  %vm178_vm1 = vcmask 64512  }
   0x4   :  { %v322_v19 = vpack.c.bf16 %v82_v18, %v81_v17  ;;  %v288_v29 = vld [vmem:[%s451_s2] ss:$0 sm:$0xff]  ;;  %76 = vst.msk [vmem:[#allocation2 + $0x8] sm:$0xff] %vm27_vm0, %v362_v39  ;;  %75 = vst.msk [vmem:[#allocation2] sm:$0xff] %vm27_vm0, %v362_v39  ;;  %s363_s2 = smov [#allocation4]  }
   0x5   :  { %319 = vmatprep.subr.bf16.mxu0 %v318_v16  ;;  %v177_v38 = vld [vmem:[%s453_s4] sm:$0xff]  ;;  %s276_s4 = sshll.u32 %s363_s2, 4  ;;  %s277_s4 = int_to_ptr.vmem [resolvable:$true] %s276_s4 }
   0x6   :  { %321 = vmatpush3.bf16.msra.mxu0 %v318_v16  ;;  %313 = vmatprep.subr.mxu1 %v177_v38  ;;  %s338_s8 = scalar_lea.vmem %s277_s4, 256  ;;  %p343_p1 = scmp.lt.s32.totalorder %s277_s4, %s277_s4 }
   0x7   :  { %32 = vadd.xlane.f32.xlu0 %v31_v3  ;;  %323 = vmatprep.subr.bf16.mxu0 %v322_v19  ;;  %p339_p0 = scmp.ne.s32.totalorder %s277_s4, %s338_s8  ;;  %p344_p2 = scmp.lt.s32.totalorder %s338_s8, %s338_s8 }
   0x8   :  { %314 = vmatpush3.msra.mxu1 %v177_v38 }
   0x9   :  { %p345_p3 = por %p344_p2, %p343_p1 }
   0xa   :  { %325 = vmatpush3.bf16.msra.mxu0 %v322_v19 }
   0xb   :  { %v176_v52 = vld [vmem:[#allocation2 + $0x8] sm:$0xff]  ;;  %v175_v53 = vld [vmem:[#allocation2] sm:$0xff]  ;;  %p346_p4 = pnand %p345_p3, %p339_p0 }
  0x90   :  { %v30_v4 = vpop.xlane.xlu0 %29 }
  0x91   :  { %v35_v5 = vmul.f32 0.03125, %v30_v4 }
  0x93   :  { %v37_v6 = vsub.f32 %v25_v0, %v35_v5 }
  0x94   :  { %v33_v7 = vpop.xlane.xlu0 %32 }
  0x95   :  { %v36_v8 = vmul.f32 0.03125, %v33_v7  ;;  %v39_v9 = vmul.f32 %v37_v6, %v37_v6 }
  0x97   :  { %v38_v10 = vsub.f32 %v26_v1, %v36_v8  ;;  %v41_v11 = vsel %vm27_vm0, %v39_v9, 0.0 }
  0x98   :  { %42 = vadd.xlane.f32.xlu1 %v41_v11 }
  0x99   :  { %v40_v12 = vmul.f32 %v38_v10, %v38_v10 }
  0x9b   :  { %v44_v13 = vsel %vm27_vm0, %v40_v12, 0.0 }
  0x9c   :  { %45 = vadd.xlane.f32.xlu1 %v44_v13 }
 0x125   :  { %v43_v20 = vpop.xlane.xlu1 %42 }
 0x126   :  { %v47_v21 = vmul.f32 0.03125, %v43_v20 }
 0x128   :  { %v49_v22 = vadd.f32 1e-05, %v47_v21 }
 0x129   :  { %v46_v23 = vpop.xlane.xlu1 %45 }
 0x12a   :  { %330 = vrsqrt.f32 %v49_v22  ;;  %v48_v24 = vmul.f32 0.03125, %v46_v23 }
 0x12c   :  { %v50_v25 = vadd.f32 1e-05, %v48_v24 }
 0x12e   :  { %332 = vrsqrt.f32 %v50_v25 }
 0x134   :  { %v331_v26 = vpop.eup %330 }
 0x135   :  { %v53_v28 = vmul.f32 %v331_v26, %v37_v6 }
 0x137   :  { %v62_v30 = vmul.f32 %v287_v27, %v53_v28 }
 0x138   :  { %v333_v31 = vpop.eup %332 }
 0x139   :  { %v71_v32 = vadd.f32 %v288_v29, %v62_v30  ;;  %v54_v33 = vmul.f32 %v333_v31, %v38_v10 }
 0x13b   :  { %73 = vst.msk [vmem:[#allocation3] sm:$0xff] %vm27_vm0, %v71_v32  ;;  %v63_v34 = vmul.f32 %v287_v27, %v54_v33 }
 0x13d   :  { %v72_v35 = vadd.f32 %v288_v29, %v63_v34 }
 0x13f   :  { %74 = vst.msk [vmem:[#allocation3 + $0x8] sm:$0xff] %vm27_vm0, %v72_v35 }
 0x142   :  { %v77_v36 = vld [vmem:[#allocation3] sm:$0xff] }
 0x143   :  { %310 = vmatprep.mubr.msk.f32.mxu0 %vm27_vm0, %v77_v36 }
 0x146   :  { %v78_v37 = vld [vmem:[#allocation3 + $0x8] sm:$0xff] }
 0x147   :  { %311 = vmatmul.mubr.msk.f32.vlgmr.msra.gmra.mrb[0].mxu0 %vm27_vm0, %v78_v37 }
 0x21a   :  { %v312_v40 = vpop.f32.mrb[0].mxu0 }
 0x21b   :  { %v168_v41 = vmul.f32 0.70710677, %v312_v40  ;;  %v156_v42 = vpop.f32.mrb[1].mxu0  ;;  %v166_v49 = vmul.f32 0.5, %v312_v40 }
 0x21c   :  { %v167_v43 = vmul.f32 0.70710677, %v156_v42  ;;  %v165_v47 = vmul.f32 0.5, %v156_v42 }
 0x21d   :  { %334 = verf.f32 %v168_v41 }
 0x21e   :  { %336 = verf.f32 %v167_v43 }
 0x227   :  { %v335_v44 = vpop.eup %334 }
 0x228   :  { %v337_v45 = vpop.eup %336  ;;  %v172_v46 = vadd.f32 1.0, %v335_v44 }
 0x229   :  { %v171_v48 = vadd.f32 1.0, %v337_v45 }
 0x22a   :  { %v174_v51 = vmul.f32 %v172_v46, %v166_v49 }
 0x22b   :  { %v173_v50 = vmul.f32 %v171_v48, %v165_v47 }
 0x22d   :  { %315 = vmatprep.mubr.msk.f32.mxu1 %vm178_vm1, %v173_v50 }
 0x22e   :  { %316 = vmatmul.mubr.msk.f32.vlgmr.msra.gmra.mrb[0].mxu1 %vm178_vm1, %v174_v51 }
 0x301   :  { %v317_v54 = vpop.f32.mrb[0].mxu1 }
 0x302   :  { %v261_v55 = vadd.f32 %v317_v54, %v176_v52  ;;  %v251_v56 = vpop.f32.mrb[1].mxu1 }
 0x303   :  { %v260_v57 = vadd.f32 %v251_v56, %v175_v53 }
 0x304   :  { %263 = vst.msk [vmem:[#allocation2 + $0x8] sm:$0xff] %vm27_vm0, %v261_v55 }
 0x305   :  { %262 = vst.msk [vmem:[#allocation2] sm:$0xff] %vm27_vm0, %v260_v57 }
 0x30b   :  { %v268_v58 = vld [vmem:[#allocation2 + $0x8] sm:$0xff] }
 0x30c   :  { %v267_v59 = vld [vmem:[#allocation2] sm:$0xff]  ;;  %270 = vst.msk [vmem:[#allocation4 + $0x8] sm:$0xff] %vm27_vm0, %v268_v58 }
 0x30d   :  { %269 = vst.msk [vmem:[#allocation4] sm:$0xff] %vm27_vm0, %v267_v59 }
 0x30e   :  { %349 = shalt.err (!%p346_p4)
}
 0x30f   :  { %s350_s11 = scalar_lea.hbm %s454_s5, 256 }
 0x310   :  { %p351_p5 = scmp.ne.s32.totalorder %s454_s5, %s350_s11  ;;  %p354_p6 = scmp.lt.u32.totalorder %s350_s11, %s454_s5 }
 0x312   :  { %p356_p7 = pnand %p354_p6, %p351_p5 }
 0x314   :  { %359 = shalt.err (!%p356_p7)
}
 0x315   :  { %s364_s16 = smov 128   ;;  %s365_s17 = smov 8  }
 0x316   :  { %282 = dma.vmem_to_hbm [thread:$0]  %s277_s4, 256, %s454_s5, [#allocation5], %s364_s16, %s364_s16, %s365_s17  }
 0x317   :  { %360 = dma.done.wait [#allocation5], 256  }
 0x318   :  { %361 = vsyncadd [#allocation5], 4294967040 }
 0x319   :  { %286 = vsyncpa [#allocation5], 1 }

</bundles_post_ra>
